<compile_context>
chip_gen: v5e
topology: v5e:2x2
jax: 0.10.0
libtpu: 0.0.40
codegen_flags: <defaults>
</compile_context>

<pallas_src>
import jax
import jax.numpy as jnp
from jax.experimental import pallas as pl
from jax.experimental.pallas import tpu as pltpu

N_PAD = 128  # lane-dense padded action dimension


def _policy_kernel(x_ref, w1_ref, b1_ref, w2_ref, b2_ref, o_ref):
    # fc1 + ReLU: bf16 operands on the MXU, f32 accumulate / bias / activation.
    x = x_ref[...].astype(jnp.bfloat16)
    h = jnp.dot(x, w1_ref[...], preferred_element_type=jnp.float32) + b1_ref[...]
    h = jnp.maximum(h, 0.0)
    # fc2 (action dim pre-padded to 128 lanes; padded bias lanes are -inf).
    logits = jnp.dot(h.astype(jnp.bfloat16), w2_ref[...],
                     preferred_element_type=jnp.float32) + b2_ref[...]
    # Numerically stable softmax over the lane axis; padded lanes -> exp(-inf)=0.
    m = jnp.max(logits, axis=1, keepdims=True)
    e = jnp.exp(logits - m)
    denom = jnp.sum(e, axis=1, keepdims=True)
    o_ref[...] = (e * pl.reciprocal(denom, approx=True)).astype(o_ref.dtype)


def policy_forward(x, w1, b1, w2, b2, *, block_b=128):
    """x: [B, n_obs] f32 -> action probabilities [B, n_actions] f32."""
    B, n_obs = x.shape
    hidden, n_actions = w2.shape

    # Pad action dim to a full 128-lane tile: zero weight columns, -inf biases
    # -> padded actions get exactly zero probability after softmax.
    w2p = jnp.zeros((hidden, N_PAD), jnp.bfloat16).at[:, :n_actions].set(
        w2.astype(jnp.bfloat16))
    b2p = jnp.full((1, N_PAD), -jnp.inf, jnp.float32).at[:, :n_actions].set(b2)

    # bf16 MXU operands (cast once here; accumulation stays f32 in-kernel).
    w1b = w1.astype(jnp.bfloat16)

    # Batch tiling: Bt multiple of 8 (f32 sublane); 128 rows when batch allows
    # (matches v5e MXU, fine on v6e/v7x). Pad B so the grid divides evenly.
    bt = block_b if B >= block_b else ((B + 7) // 8) * 8
    Bp = ((B + bt - 1) // bt) * bt
    xp = x if Bp == B else jnp.pad(x, ((0, Bp - B), (0, 0)))

    out = pl.pallas_call(
        _policy_kernel,
        out_shape=jax.ShapeDtypeStruct((Bp, N_PAD), jnp.float32),
        grid=(Bp // bt,),
        in_specs=[
            pl.BlockSpec((bt, n_obs), lambda i: (i, 0)),   # batch tile of states
            pl.BlockSpec(w1b.shape, lambda i: (0, 0)),      # weights resident
            pl.BlockSpec(b1.shape, lambda i: (0, 0)),       # across the grid
            pl.BlockSpec(w2p.shape, lambda i: (0, 0)),
            pl.BlockSpec(b2p.shape, lambda i: (0, 0)),
        ],
        out_specs=pl.BlockSpec((bt, N_PAD), lambda i: (i, 0)),  # lane-dense store
        compiler_params=pltpu.CompilerParams(
            dimension_semantics=("parallel",)),  # v7x: shard batch tiles on 2 TCs
    )(xp, w1b, b1, w2p, b2p)

    return out[:B, :n_actions]


def init_params(key, n_obs, n_actions, hidden_size):
    """PyTorch nn.Linear default init: U[-1/sqrt(fan_in), +1/sqrt(fan_in)]."""
    k1, k2, k3, k4 = jax.random.split(key, 4)
    bound1 = 1.0 / jnp.sqrt(n_obs)
    bound2 = 1.0 / jnp.sqrt(hidden_size)
    # stored as [in, out] (transposed relative to torch's [out, in])
    w1 = jax.random.uniform(k1, (n_obs, hidden_size), jnp.float32, -bound1, bound1)
    b1 = jax.random.uniform(k2, (1, hidden_size), jnp.float32, -bound1, bound1)
    w2 = jax.random.uniform(k3, (hidden_size, n_actions), jnp.float32, -bound2, bound2)
    b2 = jax.random.uniform(k4, (1, n_actions), jnp.float32, -bound2, bound2)
    return w1, b1, w2, b2


def _reference(x, w1, b1, w2, b2):
    h = jnp.maximum(x @ w1 + b1, 0.0)
    return jax.nn.softmax(h @ w2 + b2, axis=1)


if __name__ == "__main__":
    # CartPole-like sizes: n_obs=4, n_actions=2, hidden=256.
    n_obs, n_actions, hidden = 4, 2, 256

    key = jax.random.PRNGKey(0)
    kx, kx2, kp = jax.random.split(key, 3)
    w1, b1, w2, b2 = init_params(kp, n_obs, n_actions, hidden)

    # Batched rollout-style call: many env states per launch (2 tiles of 128).
    batch = 256
    x = jax.random.normal(kx, (batch, n_obs), jnp.float32)
    probs = jax.block_until_ready(policy_forward(x, w1, b1, w2, b2))
    ref = _reference(x, w1, b1, w2, b2)
    assert probs.shape == (batch, n_actions)
    # bf16 MXU operands + approx reciprocal -> loosened tolerance (per review).
    assert jnp.allclose(probs, ref, atol=2e-2), "mismatch vs reference (batched)"
    assert jnp.allclose(jnp.sum(probs, axis=1), 1.0, atol=1e-2)

    # Tiny single-step case (original B=2) exercises the padding path.
    x_small = jax.random.normal(kx2, (2, n_obs), jnp.float32)
    probs_small = jax.block_until_ready(policy_forward(x_small, w1, b1, w2, b2))
    ref_small = _reference(x_small, w1, b1, w2, b2)
    assert probs_small.shape == (2, n_actions)
    assert jnp.allclose(probs_small, ref_small, atol=2e-2), "mismatch (tiny batch)"
    assert jnp.allclose(jnp.sum(probs_small, axis=1), 1.0, atol=1e-2)

    # TODO(synk): Adam optimizer state and get_action's host-side numpy sampling /
    # log-prob bookkeeping are not part of the forward pass and are left out.
    print("KERNEL_OK")
</pallas_src>

<mosaic_0001>
module attributes {stable_mosaic.version = 11 : i64} {
  func.func @_policy_kernel(%arg0: i32, %arg1: memref<128x4xf32, #tpu.memory_space<vmem>>, %arg2: memref<4x256xbf16, #tpu.memory_space<vmem>>, %arg3: memref<1x256xf32, #tpu.memory_space<vmem>>, %arg4: memref<256x128xbf16, #tpu.memory_space<vmem>>, %arg5: memref<1x128xf32, #tpu.memory_space<vmem>>, %arg6: memref<128x128xf32, #tpu.memory_space<vmem>>) attributes {dimension_semantics = [#tpu.dimension_semantics<parallel>], iteration_bounds = array<i64: 2>, scalar_prefetch = 0 : i64, scratch_operands = 0 : i64, tpu.core_type = #tpu.core_type<tc>, window_params = [{transform_indices = @transform_0, window_bounds = array<i64: 128, 4>}, {pipeline_mode = #tpu.pipeline_mode<synchronous>, transform_indices = @transform_1, window_bounds = array<i64: 4, 256>}, {pipeline_mode = #tpu.pipeline_mode<synchronous>, transform_indices = @transform_2, window_bounds = array<i64: 1, 256>}, {pipeline_mode = #tpu.pipeline_mode<synchronous>, transform_indices = @transform_3, window_bounds = array<i64: 256, 128>}, {pipeline_mode = #tpu.pipeline_mode<synchronous>, transform_indices = @transform_4, window_bounds = array<i64: 1, 128>}, {transform_indices = @transform_5, window_bounds = array<i64: 128, 128>}]} {
    %c0 = arith.constant 0 : index
    %c0_0 = arith.constant 0 : index
    %0 = vector.load %arg1[%c0, %c0_0] : memref<128x4xf32, #tpu.memory_space<vmem>>, vector<128x4xf32>
    %1 = arith.truncf %0 : vector<128x4xf32> to vector<128x4xbf16>
    %c0_1 = arith.constant 0 : index
    %c0_2 = arith.constant 0 : index
    %2 = vector.load %arg2[%c0_1, %c0_2] : memref<4x256xbf16, #tpu.memory_space<vmem>>, vector<4x256xbf16>
    %cst = arith.constant dense<0.000000e+00> : vector<128x256xf32>
    %3 = tpu.matmul %1, %2, %cst {dimension_numbers = #tpu.dot_dimension_numbers<[1], [0], [0], [1], [0, 0, 1, 1], [], []>} : vector<128x4xbf16>, vector<4x256xbf16>, vector<128x256xf32> -> vector<128x256xf32>
    %c0_3 = arith.constant 0 : index
    %c0_4 = arith.constant 0 : index
    %4 = vector.load %arg3[%c0_3, %c0_4] : memref<1x256xf32, #tpu.memory_space<vmem>>, vector<1x256xf32>
    %5 = vector.broadcast %4 : vector<1x256xf32> to vector<128x256xf32>
    %6 = arith.addf %3, %5 : vector<128x256xf32>
    %cst_5 = arith.constant 0.000000e+00 : f32
    %7 = vector.broadcast %cst_5 : f32 to vector<128x256xf32>
    %8 = arith.maximumf %6, %7 : vector<128x256xf32>
    %9 = arith.truncf %8 : vector<128x256xf32> to vector<128x256xbf16>
    %c0_6 = arith.constant 0 : index
    %c0_7 = arith.constant 0 : index
    %10 = vector.load %arg4[%c0_6, %c0_7] : memref<256x128xbf16, #tpu.memory_space<vmem>>, vector<256x128xbf16>
    %cst_8 = arith.constant dense<0.000000e+00> : vector<128x128xf32>
    %11 = tpu.matmul %9, %10, %cst_8 {dimension_numbers = #tpu.dot_dimension_numbers<[1], [0], [0], [1], [0, 0, 1, 1], [], []>} : vector<128x256xbf16>, vector<256x128xbf16>, vector<128x128xf32> -> vector<128x128xf32>
    %c0_9 = arith.constant 0 : index
    %c0_10 = arith.constant 0 : index
    %12 = vector.load %arg5[%c0_9, %c0_10] : memref<1x128xf32, #tpu.memory_space<vmem>>, vector<1x128xf32>
    %13 = vector.broadcast %12 : vector<1x128xf32> to vector<128x128xf32>
    %14 = arith.addf %11, %13 : vector<128x128xf32>
    %cst_11 = arith.constant dense<0xFF800000> : vector<128xf32>
    %15 = vector.multi_reduction <maximumf>, %14, %cst_11 [1] : vector<128x128xf32> to vector<128xf32>
    %16 = vector.shape_cast %15 : vector<128xf32> to vector<128x1xf32>
    %17 = vector.broadcast %16 : vector<128x1xf32> to vector<128x128xf32>
    %18 = arith.subf %14, %17 : vector<128x128xf32>
    %19 = math.exp %18 : vector<128x128xf32>
    %cst_12 = arith.constant dense<0.000000e+00> : vector<128xf32>
    %20 = vector.multi_reduction <add>, %19, %cst_12 [1] : vector<128x128xf32> to vector<128xf32>
    %21 = vector.shape_cast %20 : vector<128xf32> to vector<128x1xf32>
    %22 = tpu.reciprocal %21 {approx = true} : vector<128x1xf32> -> vector<128x1xf32>
    %23 = vector.broadcast %22 : vector<128x1xf32> to vector<128x128xf32>
    %24 = arith.mulf %19, %23 : vector<128x128xf32>
    %c0_13 = arith.constant 0 : index
    %c0_14 = arith.constant 0 : index
    %25 = vector.load %arg6[%c0_13, %c0_14] : memref<128x128xf32, #tpu.memory_space<vmem>>, vector<128x128xf32>
    tpu.vector_store %arg6[%c0_13, %c0_14], %24 {strides = array<i32>} : memref<128x128xf32, #tpu.memory_space<vmem>>, vector<128x128xf32>,
    return
  }
  func.func @transform_0(%arg0: i32) -> (i32, i32) {
    %c0_i32 = arith.constant 0 : i32
    %c0_i32_0 = arith.constant 0 : i32
    return %arg0, %c0_i32 : i32, i32
  }
  func.func @transform_1(%arg0: i32) -> (i32, i32) {
    %c0_i32 = arith.constant 0 : i32
    %c0_i32_0 = arith.constant 0 : i32
    %c0_i32_1 = arith.constant 0 : i32
    return %c0_i32, %c0_i32_0 : i32, i32
  }
  func.func @transform_2(%arg0: i32) -> (i32, i32) {
    %c0_i32 = arith.constant 0 : i32
    %c0_i32_0 = arith.constant 0 : i32
    %c0_i32_1 = arith.constant 0 : i32
    return %c0_i32, %c0_i32_0 : i32, i32
  }
  func.func @transform_3(%arg0: i32) -> (i32, i32) {
    %c0_i32 = arith.constant 0 : i32
    %c0_i32_0 = arith.constant 0 : i32
    %c0_i32_1 = arith.constant 0 : i32
    return %c0_i32, %c0_i32_0 : i32, i32
  }
  func.func @transform_4(%arg0: i32) -> (i32, i32) {
    %c0_i32 = arith.constant 0 : i32
    %c0_i32_0 = arith.constant 0 : i32
    %c0_i32_1 = arith.constant 0 : i32
    return %c0_i32, %c0_i32_0 : i32, i32
  }
  func.func @transform_5(%arg0: i32) -> (i32, i32) {
    %c0_i32 = arith.constant 0 : i32
    %c0_i32_0 = arith.constant 0 : i32
    return %arg0, %c0_i32 : i32, i32
  }
}

</mosaic_0001>

<bundles_post_ra>
// kernel: tpu_custom_call.1
= control target key start
LH: loop header
LB: loop body
LE: loop exit
PB: predicated region body
PF: predicated region fallthrough
CT: control target
= control target key end

     0   :  { %10 = vsyncpa [#allocation3], 0  ;;  %s1597_s0 = inlined_call_operand.vmem [shape: f32[256,4], index: 0, kind: input, shape index: {}]   ;;  %s1598_s1 = inlined_call_operand.vmem [shape: bf16[4,256], index: 1, kind: input, shape index: {}]   ;;  %s1599_s2 = inlined_call_operand.vmem [shape: f32[1,256], index: 2, kind: input, shape index: {}]   ;;  %s1600_s3 = inlined_call_operand.vmem [shape: bf16[256,128], index: 3, kind: input, shape index: {}]   ;;  %s1601_s4 = inlined_call_operand.vmem [shape: f32[1,128], index: 4, kind: input, shape index: {}]   ;;  %s1602_s5 = inlined_call_operand.hbm [shape: f32[256,128], index: 5, kind: output, shape index: {}]  }
   0x1   :  { %12 = vsyncpa [#allocation3 + $0x1], 0  ;;  %s1217_s18 = smov 0   ;;  %s1219_s19 = smov 0  }
   0x2   :  { %s1221_s20 = smov 0   ;;  %s1223_s21 = smov 0  }
   0x3 LB: > { %s1238_s22 = sadd.s32 4294967295, %s1183_s21   ;;  %s906_s23 = sadd.s32 4294967294, %s1183_s21   ;;  %s1183_s21 = sphi %s1223_s21, %s1608_s21   ;;  %s1179_s20 = sphi %s1221_s20, %s1607_s20   ;;  %s1175_s19 = sphi %s1219_s19, %s1606_s19   ;;  %s1171_s18 = sphi %s1217_s18, %s1605_s18  }
   0x4   : > { %s1242_s24 = sadd.s32 1, %s1183_s21   ;;  %s135_s25 = sadd.s32 1, %s1179_s20 }
   0x5   : > { %s132_s26 = ssub.s32 %s1183_s21, %s1242_s24  ;;  %p145_p0 = scmp.ne.s32.totalorder %s1179_s20, %s1175_s19 }
   0x6   : > { %p133_p1 = scmp.eq.s32.totalorder %s132_s26, 0  ;;  %p146_p2 = scmp.eq.s32.totalorder %s1238_s22, 1 }
   0x7   : > { %p151_p3 = scmp.ne.s32.totalorder %s1175_s19, %s1171_s18  ;;  %p152_p4 = scmp.eq.s32.totalorder %s906_s23, 1 }
   0x8   : > { %s1253_s27 = scalar_select %p133_p1, %s1179_s20, %s135_s25  }
   0x9   : > { %p1255_p5 = por %p146_p2, %p145_p0  ;;  %p1259_p6 = por %p152_p4, %p151_p3 }
   0xa   : > { %p909_p7 = scmp.ge.s32.totalorder %s1183_s21, 1  ;;  %p191_p8 = scmp.lt.s32.totalorder %s1183_s21, 3 }
   0xc   : > { %p192_p9 = pnand %p909_p7, %p191_p8 }
   0xd   : > { %s911_s7 = sshll.u32 (!%p192_p9), %s1238_s22, 4  ;;  %s216_s17 = sand.u32 (!%p192_p9), 1, %s1175_s19  }
   0xe   : > { %195 = sbr.rel (%p192_p9) target bundleno = 684 (0x2ac), region = 40  ;;  %p220_p10 = scmp.lt.s32.totalorder (!%p192_p9), %s911_s7, 31 }
   0xf   : > { %s910_s23 = sshll.u32 (!%p192_p9), %s216_s17, 7  ;;  %s1014_s26 = sshll.u32 (!%p192_p9), %s1238_s22, 7 }
  0x10   : > { %s1530_s25 = scalar_lea.vmem (!%p192_p9), [#allocation2], %s910_s23  ;;  %s829_s22 = scalar_lea.sflag (!%p192_p9), [#allocation3], %s216_s17 }
  0x11   : > { %s1141_s15 = scalar_lea.hbm (!%p192_p9), %s1602_s5, 256 }
  0x13   : > { %v251_v0 = vld [vmem:[%s1598_s1] sm:$0xf]  ;;  %s1610_s7 = smov (!%p220_p10, %s911_s7), 31  ;;  %vm287_vm0 = vcmask 1041408   ;;  %vm262_vm1 = vcmask 31744   ;;  %v1005_v20 = vld [vmem:[%s1600_s3 + $0x38] sm:$0xff] }
  0x14   : > { %259 = vst [vmem:[#allocation1] ss:$4 sm:$0xff] %v251_v0  ;;  %s912_s8 = sshll.u32 %s1610_s7, 3  ;;  %v1013_v21 = vld [vmem:[%s1600_s3 + $0x78] sm:$0xff]  ;;  %570 = vmatpush.bf16.msra.mxu2 %v1005_v20  ;;  %v1004_v25 = vld [vmem:[%s1600_s3 + $0x30] sm:$0xff]  ;;  %v1003_v27 = vld [vmem:[%s1600_s3 + $0x28] sm:$0xff]  ;;  %s840_s7 = scalar_lea.hbm %s1602_s5, %s1014_s26 }
  0x15   : > { %s1272_s11 = scalar_lea.vmem %s1597_s0, %s912_s8  ;;  %619 = vmatpush.bf16.msra.mxu3 %v1013_v21  ;;  %v1012_v26 = vld [vmem:[%s1600_s3 + $0x70] sm:$0xff]  ;;  %v1011_v28 = vld [vmem:[%s1600_s3 + $0x68] sm:$0xff]  ;;  %v1002_v29 = vld [vmem:[%s1600_s3 + $0x20] sm:$0xff]  ;;  %s841_s8 = sshll.u32 %s1530_s25, 4  ;;  %s842_s8 = int_to_ptr.vmem [resolvable:$true] %s841_s8 }
  0x16   : > { %v227_v1 = vld [vmem:[%s1272_s11] sm:$0xff]  ;;  %v228_v2 = vld [vmem:[%s1272_s11 + $0x8] sm:$0xff]  ;;  %v229_v8 = vld [vmem:[%s1272_s11 + $0x10] sm:$0xff]  ;;  %s843_s9 = sshll.u32 %s840_s7, 4  ;;  %s844_s9 = int_to_ptr.hbm [resolvable:$true] %s843_s9 }
  0x17   : > { %v243_v7 = vpack.c.bf16 %v228_v2, %v227_v1  ;;  %v230_v9 = vld [vmem:[%s1272_s11 + $0x18] sm:$0xff]  ;;  %v231_v11 = vld [vmem:[%s1272_s11 + $0x20] sm:$0xff]  ;;  %v232_v12 = vld [vmem:[%s1272_s11 + $0x28] sm:$0xff]  ;;  %s1135_s10 = sshra.s32 %s844_s9, 4  ;;  %s1136_s10 = int_to_ptr.hbm [resolvable:$true] %s1135_s10 }
  0x18   : > { %v244_v10 = vpack.c.bf16 %v230_v9, %v229_v8  ;;  %v245_v13 = vpack.c.bf16 %v232_v12, %v231_v11  ;;  %v233_v14 = vld [vmem:[%s1272_s11 + $0x30] sm:$0xff]  ;;  %v234_v15 = vld [vmem:[%s1272_s11 + $0x38] sm:$0xff]  ;;  %v235_v17 = vld [vmem:[%s1272_s11 + $0x40] sm:$0xff]  ;;  %571 = vmatpush.bf16.msra.mxu2 %v1004_v25  ;;  %s1137_s12 = scalar_lea.hbm %s1136_s10, 128  ;;  %p1142_p0 = scmp.lt.s32.totalorder %s1136_s10, %s1602_s5 }
  0x19   : > { %v246_v16 = vpack.c.bf16 %v234_v15, %v233_v14  ;;  %v236_v18 = vld [vmem:[%s1272_s11 + $0x48] sm:$0xff]  ;;  %v237_v22 = vld [vmem:[%s1272_s11 + $0x50] sm:$0xff]  ;;  %v238_v23 = vld [vmem:[%s1272_s11 + $0x58] sm:$0xff]  ;;  %620 = vmatpush.bf16.msra.mxu3 %v1012_v26  ;;  %p1138_p11 = scmp.ne.s32.totalorder %s1136_s10, %s1137_s12  ;;  %p1143_p1 = scmp.lt.s32.totalorder %s1141_s15, %s1137_s12 }
  0x1a   : > { %v247_v19 = vpack.c.bf16 %v236_v18, %v235_v17  ;;  %v248_v24 = vpack.c.bf16 %v238_v23, %v237_v22  ;;  %v1010_v30 = vld [vmem:[%s1600_s3 + $0x60] sm:$0xff]  ;;  %v240_v32 = vld [vmem:[%s1272_s11 + $0x68] sm:$0xff]  ;;  %v1001_v33 = vld [vmem:[%s1600_s3 + $0x18] sm:$0xff] }
  0x1b   : > { %v260_v3 = vld.sshfl [vmem:[#allocation1] sm:$0xff pattern:$0x73625140]  ;;  %v261_v4 = vld.sshfl [vmem:[#allocation1 + $0x8] sm:$0xff pattern:$0x73625140]  ;;  %p1139_p12 = pnand %p1138_p11, %p1255_p5  ;;  %p1144_p2 = por %p1143_p1, %p1142_p0 }
  0x1c   : > { %v288_v5 = vsel %vm287_vm0, %v260_v3, 0  ;;  %v290_v6 = vsel %vm287_vm0, %v261_v4, 0  ;;  %572 = vmatpush.bf16.msra.mxu2 %v1003_v27  ;;  %v239_v31 = vld [vmem:[%s1272_s11 + $0x60] sm:$0xff]  ;;  %v1009_v34 = vld [vmem:[%s1600_s3 + $0x58] sm:$0xff]  ;;  %v1000_v36 = vld [vmem:[%s1600_s3 + $0x10] sm:$0xff] }
  0x1d   : > { %299 = vmatpush.bf16.msra.mxu0 %v288_v5  ;;  %348 = vmatpush.bf16.msra.mxu1 %v290_v6  ;;  %v249_v35 = vpack.c.bf16 %v240_v32, %v239_v31  ;;  %v1008_v37 = vld [vmem:[%s1600_s3 + $0x50] sm:$0xff]  ;;  %v999_v38 = vld [vmem:[%s1600_s3 + $0x8] sm:$0xff]  ;;  %v998_v40 = vld [vmem:[%s1600_s3] sm:$0xff]  ;;  %p1140_p13 = pneg %p1139_p12 }
  0x1e   : > { %621 = vmatpush.bf16.msra.mxu3 %v1011_v28  ;;  %v1007_v39 = vld [vmem:[%s1600_s3 + $0x48] sm:$0xff]  ;;  %v1006_v41 = vld [vmem:[%s1600_s3 + $0x40] sm:$0xff]  ;;  %v241_v42 = vld [vmem:[%s1272_s11 + $0x70] sm:$0xff] }
  0x1f   : > { %v242_v43 = vld [vmem:[%s1272_s11 + $0x78] sm:$0xff]  ;;  %v252_v45 = vld [vmem:[%s1599_s2] sm:$0x3]  ;;  %p1145_p3 = pnand %p1144_p2, %p1140_p13 }
  0x20   : > { %913 = vmatmul.msk.bf16.vlgmr.msra.gmra.mxu0 %vm262_vm1, %v243_v7  ;;  %921 = vmatmul.msk.bf16.vlgmr.msra.gmra.mxu1 %vm262_vm1, %v243_v7  ;;  %v250_v44 = vpack.c.bf16 %v242_v43, %v241_v42  ;;  %v1357_v48 = vperm.slane %v252_v45, 0  ;;  %v1359_v49 = vperm.slane %v252_v45, 1 }
  0x21   : > { %573 = vmatpush.bf16.msra.mxu2 %v1002_v29 }
  0x22   : > { %622 = vmatpush.bf16.msra.mxu3 %v1010_v30 }
  0x25   : > { %574 = vmatpush.bf16.msra.mxu2 %v1001_v33 }
  0x26   : > { %623 = vmatpush.bf16.msra.mxu3 %v1009_v34 }
  0x29   : > { %575 = vmatpush.bf16.msra.mxu2 %v1000_v36 }
  0x2a   : > { %624 = vmatpush.bf16.msra.mxu3 %v1008_v37 }
  0x2d   : > { %576 = vmatpush.bf16.msra.mxu2 %v999_v38 }
  0x2e   : > { %625 = vmatpush.bf16.msra.mxu3 %v1007_v39 }
  0x30   : > { %914 = vmatmul.msk.bf16.gmra.mxu0 %vm262_vm1, %v244_v10  ;;  %922 = vmatmul.msk.bf16.gmra.mxu1 %vm262_vm1, %v244_v10 }
  0x31   : > { %577 = vmatpush.bf16.msra.mxu2 %v998_v40 }
  0x32   : > { %626 = vmatpush.bf16.msra.mxu3 %v1006_v41 }
  0x40   : > { %915 = vmatmul.msk.bf16.gmra.mxu0 %vm262_vm1, %v245_v13  ;;  %923 = vmatmul.msk.bf16.gmra.mxu1 %vm262_vm1, %v245_v13 }
  0x50   : > { %916 = vmatmul.msk.bf16.gmra.mxu0 %vm262_vm1, %v246_v16  ;;  %924 = vmatmul.msk.bf16.gmra.mxu1 %vm262_vm1, %v246_v16 }
  0x60   : > { %917 = vmatmul.msk.bf16.gmra.mxu0 %vm262_vm1, %v247_v19  ;;  %925 = vmatmul.msk.bf16.gmra.mxu1 %vm262_vm1, %v247_v19 }
  0x70   : > { %918 = vmatmul.msk.bf16.gmra.mxu0 %vm262_vm1, %v248_v24  ;;  %926 = vmatmul.msk.bf16.gmra.mxu1 %vm262_vm1, %v248_v24 }
  0x80   : > { %919 = vmatmul.msk.bf16.gmra.mxu0 %vm262_vm1, %v249_v35  ;;  %927 = vmatmul.msk.bf16.gmra.mxu1 %vm262_vm1, %v249_v35 }
  0x90   : > { %920 = vmatmul.msk.bf16.gmra.mxu0 %vm262_vm1, %v250_v44  ;;  %928 = vmatmul.msk.bf16.gmra.mxu1 %vm262_vm1, %v250_v44 }
  0x9d   : > { %v301_v46 = vpop.f32.mrf.mxu0  ;;  %v350_v47 = vpop.f32.mrf.mxu1 }
  0x9e   : > { %v302_v50 = vadd.f32 %v301_v46, %v1357_v48  ;;  %v351_v51 = vadd.f32 %v350_v47, %v1359_v49 }
  0xa0   : > { %v390_v56 = vmax.f32 %v302_v50, 0.0  ;;  %v391_v57 = vmax.f32 %v351_v51, 0.0 }
  0xa5   : > { %v303_v52 = vpop.f32.mrf.mxu0  ;;  %v352_v53 = vpop.f32.mrf.mxu1 }
  0xa6   : > { %v304_v54 = vadd.f32 %v303_v52, %v1357_v48  ;;  %v353_v55 = vadd.f32 %v352_v53, %v1359_v49 }
  0xa8   : > { %v392_v58 = vmax.f32 %v304_v54, 0.0  ;;  %v393_v59 = vmax.f32 %v353_v55, 0.0 }
  0xaa   : > { %v422_v60 = vpack.c.bf16 %v392_v58, %v390_v56  ;;  %v423_v61 = vpack.c.bf16 %v393_v59, %v391_v57 }
  0xac   : > { %578 = vmatmul.bf16.vlgmr.msra.gmra.mxu2 %v422_v60  ;;  %627 = vmatmul.bf16.vlgmr.msra.gmra.mxu3 %v423_v61 }
  0xad   : > { %v306_v62 = vpop.f32.mrf.mxu0  ;;  %v355_v63 = vpop.f32.mrf.mxu1 }
  0xae   : > { %v307_v0 = vadd.f32 %v306_v62, %v1357_v48  ;;  %v356_v1 = vadd.f32 %v355_v63, %v1359_v49 }
  0xb0   : > { %v394_v6 = vmax.f32 %v307_v0, 0.0  ;;  %v395_v7 = vmax.f32 %v356_v1, 0.0 }
  0xb5   : > { %v308_v2 = vpop.f32.mrf.mxu0  ;;  %v357_v3 = vpop.f32.mrf.mxu1 }
  0xb6   : > { %v309_v4 = vadd.f32 %v308_v2, %v1357_v48  ;;  %v358_v5 = vadd.f32 %v357_v3, %v1359_v49 }
  0xb8   : > { %v396_v8 = vmax.f32 %v309_v4, 0.0  ;;  %v397_v9 = vmax.f32 %v358_v5, 0.0 }
  0xba   : > { %v424_v10 = vpack.c.bf16 %v396_v8, %v394_v6  ;;  %v425_v11 = vpack.c.bf16 %v397_v9, %v395_v7 }
  0xbc   : > { %583 = vmatmul.bf16.gmra.mxu2 %v424_v10  ;;  %632 = vmatmul.bf16.gmra.mxu3 %v425_v11 }
  0xbd   : > { %v311_v12 = vpop.f32.mrf.mxu0  ;;  %v360_v13 = vpop.f32.mrf.mxu1 }
  0xbe   : > { %v312_v14 = vadd.f32 %v311_v12, %v1357_v48  ;;  %v361_v15 = vadd.f32 %v360_v13, %v1359_v49 }
  0xc0   : > { %v398_v20 = vmax.f32 %v312_v14, 0.0  ;;  %v399_v21 = vmax.f32 %v361_v15, 0.0 }
  0xc5   : > { %v313_v16 = vpop.f32.mrf.mxu0  ;;  %v362_v17 = vpop.f32.mrf.mxu1 }
  0xc6   : > { %v314_v18 = vadd.f32 %v313_v16, %v1357_v48  ;;  %v363_v19 = vadd.f32 %v362_v17, %v1359_v49 }
  0xc8   : > { %v400_v22 = vmax.f32 %v314_v18, 0.0  ;;  %v401_v23 = vmax.f32 %v363_v19, 0.0 }
  0xca   : > { %v426_v24 = vpack.c.bf16 %v400_v22, %v398_v20  ;;  %v427_v25 = vpack.c.bf16 %v401_v23, %v399_v21 }
  0xcc   : > { %588 = vmatmul.bf16.gmra.mxu2 %v426_v24  ;;  %637 = vmatmul.bf16.gmra.mxu3 %v427_v25 }
  0xcd   : > { %v316_v26 = vpop.f32.mrf.mxu0  ;;  %v365_v27 = vpop.f32.mrf.mxu1 }
  0xce   : > { %v317_v28 = vadd.f32 %v316_v26, %v1357_v48  ;;  %v366_v29 = vadd.f32 %v365_v27, %v1359_v49 }
  0xd0   : > { %v402_v34 = vmax.f32 %v317_v28, 0.0  ;;  %v403_v35 = vmax.f32 %v366_v29, 0.0 }
  0xd5   : > { %v318_v30 = vpop.f32.mrf.mxu0  ;;  %v367_v31 = vpop.f32.mrf.mxu1 }
  0xd6   : > { %v319_v32 = vadd.f32 %v318_v30, %v1357_v48  ;;  %v368_v33 = vadd.f32 %v367_v31, %v1359_v49 }
  0xd8   : > { %v404_v36 = vmax.f32 %v319_v32, 0.0  ;;  %v405_v37 = vmax.f32 %v368_v33, 0.0 }
  0xda   : > { %v428_v38 = vpack.c.bf16 %v404_v36, %v402_v34  ;;  %v429_v39 = vpack.c.bf16 %v405_v37, %v403_v35  ;;  %v1396_v34 = vld [vmem:[%s1601_s4] ss:$0 sm:$0xff] }
  0xdc   : > { %593 = vmatmul.bf16.gmra.mxu2 %v428_v38  ;;  %642 = vmatmul.bf16.gmra.mxu3 %v429_v39 }
  0xdd   : > { %v321_v40 = vpop.f32.mrf.mxu0  ;;  %v370_v41 = vpop.f32.mrf.mxu1 }
  0xde   : > { %v322_v42 = vadd.f32 %v321_v40, %v1357_v48  ;;  %v371_v43 = vadd.f32 %v370_v41, %v1359_v49 }
  0xe0   : > { %v406_v50 = vmax.f32 %v322_v42, 0.0  ;;  %v407_v51 = vmax.f32 %v371_v43, 0.0 }
  0xe5   : > { %v323_v44 = vpop.f32.mrf.mxu0  ;;  %v372_v45 = vpop.f32.mrf.mxu1 }
  0xe6   : > { %v324_v46 = vadd.f32 %v323_v44, %v1357_v48  ;;  %v373_v47 = vadd.f32 %v372_v45, %v1359_v49 }
  0xe8   : > { %v408_v52 = vmax.f32 %v324_v46, 0.0  ;;  %v409_v53 = vmax.f32 %v373_v47, 0.0 }
  0xea   : > { %v430_v54 = vpack.c.bf16 %v408_v52, %v406_v50  ;;  %v431_v55 = vpack.c.bf16 %v409_v53, %v407_v51 }
  0xec   : > { %598 = vmatmul.bf16.gmra.mxu2 %v430_v54  ;;  %647 = vmatmul.bf16.gmra.mxu3 %v431_v55 }
  0xed   : > { %v326_v56 = vpop.f32.mrf.mxu0  ;;  %v375_v57 = vpop.f32.mrf.mxu1 }
  0xee   : > { %v327_v58 = vadd.f32 %v326_v56, %v1357_v48  ;;  %v376_v59 = vadd.f32 %v375_v57, %v1359_v49 }
  0xf0   : > { %v410_v0 = vmax.f32 %v327_v58, 0.0  ;;  %v411_v1 = vmax.f32 %v376_v59, 0.0 }
  0xf5   : > { %v328_v60 = vpop.f32.mrf.mxu0  ;;  %v377_v61 = vpop.f32.mrf.mxu1 }
  0xf6   : > { %v329_v62 = vadd.f32 %v328_v60, %v1357_v48  ;;  %v378_v63 = vadd.f32 %v377_v61, %v1359_v49 }
  0xf8   : > { %v412_v2 = vmax.f32 %v329_v62, 0.0  ;;  %v413_v3 = vmax.f32 %v378_v63, 0.0 }
  0xfa   : > { %v432_v4 = vpack.c.bf16 %v412_v2, %v410_v0  ;;  %v433_v5 = vpack.c.bf16 %v413_v3, %v411_v1 }
  0xfc   : > { %603 = vmatmul.bf16.gmra.mxu2 %v432_v4  ;;  %652 = vmatmul.bf16.gmra.mxu3 %v433_v5 }
  0xfd   : > { %v331_v6 = vpop.f32.mrf.mxu0  ;;  %v380_v7 = vpop.f32.mrf.mxu1 }
  0xfe   : > { %v332_v8 = vadd.f32 %v331_v6, %v1357_v48  ;;  %v381_v9 = vadd.f32 %v380_v7, %v1359_v49 }
 0x100   : > { %v414_v14 = vmax.f32 %v332_v8, 0.0  ;;  %v415_v15 = vmax.f32 %v381_v9, 0.0 }
 0x105   : > { %v333_v10 = vpop.f32.mrf.mxu0  ;;  %v382_v11 = vpop.f32.mrf.mxu1 }
 0x106   : > { %v334_v12 = vadd.f32 %v333_v10, %v1357_v48  ;;  %v383_v13 = vadd.f32 %v382_v11, %v1359_v49 }
 0x108   : > { %v416_v16 = vmax.f32 %v334_v12, 0.0  ;;  %v417_v17 = vmax.f32 %v383_v13, 0.0 }
 0x10a   : > { %v434_v18 = vpack.c.bf16 %v416_v16, %v414_v14  ;;  %v435_v19 = vpack.c.bf16 %v417_v17, %v415_v15 }
 0x10c   : > { %608 = vmatmul.bf16.gmra.mxu2 %v434_v18  ;;  %657 = vmatmul.bf16.gmra.mxu3 %v435_v19 }
 0x10d   : > { %v336_v20 = vpop.f32.mrf.mxu0  ;;  %v385_v21 = vpop.f32.mrf.mxu1 }
 0x10e   : > { %v337_v22 = vadd.f32 %v336_v20, %v1357_v48  ;;  %v386_v23 = vadd.f32 %v385_v21, %v1359_v49 }
 0x110   : > { %v418_v28 = vmax.f32 %v337_v22, 0.0  ;;  %v419_v29 = vmax.f32 %v386_v23, 0.0 }
 0x115   : > { %v338_v24 = vpop.f32.mrf.mxu0  ;;  %v387_v25 = vpop.f32.mrf.mxu1 }
 0x116   : > { %v339_v26 = vadd.f32 %v338_v24, %v1357_v48  ;;  %v388_v27 = vadd.f32 %v387_v25, %v1359_v49 }
 0x118   : > { %v420_v30 = vmax.f32 %v339_v26, 0.0  ;;  %v421_v31 = vmax.f32 %v388_v27, 0.0 }
 0x11a   : > { %v436_v32 = vpack.c.bf16 %v420_v30, %v418_v28  ;;  %v437_v33 = vpack.c.bf16 %v421_v31, %v419_v29 }
 0x11c   : > { %613 = vmatmul.bf16.gmra.mxu2 %v436_v32  ;;  %662 = vmatmul.bf16.gmra.mxu3 %v437_v33 }
 0x12f   : > { %v579_v35 = vpop.f32.mrf.mxu2  ;;  %v628_v36 = vpop.f32.mrf.mxu3 }
 0x130   : > { %v580_v37 = vadd.f32 %v1396_v34, %v579_v35 }
 0x132   : > { %v1399_v48 = vadd.f32 %v628_v36, %v580_v37 }
 0x134   : > { %668 = vmax.xlane.f32.xlu0 %v1399_v48 }
 0x137   : > { %v581_v49 = vpop.f32.mrf.mxu2  ;;  %v630_v38 = vpop.f32.mrf.mxu3 }
 0x138   : > { %v582_v39 = vadd.f32 %v1396_v34, %v581_v49 }
 0x13a   : > { %v1403_v40 = vadd.f32 %v630_v38, %v582_v39 }
 0x13c   : > { %670 = vmax.xlane.f32.xlu0 %v1403_v40 }
 0x13f   : > { %v584_v41 = vpop.f32.mrf.mxu2  ;;  %v633_v42 = vpop.f32.mrf.mxu3 }
 0x140   : > { %v585_v43 = vadd.f32 %v1396_v34, %v584_v41 }
 0x142   : > { %v1407_v44 = vadd.f32 %v633_v42, %v585_v43 }
 0x144   : > { %672 = vmax.xlane.f32.xlu1 %v1407_v44 }
 0x147   : > { %v586_v45 = vpop.f32.mrf.mxu2  ;;  %v635_v46 = vpop.f32.mrf.mxu3 }
 0x148   : > { %v587_v47 = vadd.f32 %v1396_v34, %v586_v45 }
 0x14a   : > { %v1411_v50 = vadd.f32 %v635_v46, %v587_v47 }
 0x14c   : > { %674 = vmax.xlane.f32.xlu1 %v1411_v50 }
 0x14f   : > { %v589_v51 = vpop.f32.mrf.mxu2  ;;  %v638_v52 = vpop.f32.mrf.mxu3 }
 0x150   : > { %v590_v53 = vadd.f32 %v1396_v34, %v589_v51 }
 0x152   : > { %v1415_v54 = vadd.f32 %v638_v52, %v590_v53 }
 0x154   : > { %676 = vmax.xlane.f32.xlu2 %v1415_v54 }
 0x157   : > { %v591_v55 = vpop.f32.mrf.mxu2  ;;  %v640_v56 = vpop.f32.mrf.mxu3 }
 0x158   : > { %v592_v57 = vadd.f32 %v1396_v34, %v591_v55 }
 0x15a   : > { %v1419_v58 = vadd.f32 %v640_v56, %v592_v57 }
 0x15c   : > { %678 = vmax.xlane.f32.xlu2 %v1419_v58 }
 0x15f   : > { %v594_v59 = vpop.f32.mrf.mxu2  ;;  %v643_v60 = vpop.f32.mrf.mxu3 }
 0x160   : > { %v595_v61 = vadd.f32 %v1396_v34, %v594_v59 }
 0x162   : > { %v1423_v62 = vadd.f32 %v643_v60, %v595_v61 }
 0x164   : > { %680 = vmax.xlane.f32.xlu0 %v1423_v62 }
 0x167   : > { %v596_v63 = vpop.f32.mrf.mxu2  ;;  %v645_v0 = vpop.f32.mrf.mxu3 }
 0x168   : > { %v597_v1 = vadd.f32 %v1396_v34, %v596_v63 }
 0x16a   : > { %v1427_v2 = vadd.f32 %v645_v0, %v597_v1 }
 0x16c   : > { %682 = vmax.xlane.f32.xlu1 %v1427_v2 }
 0x16f   : > { %v599_v3 = vpop.f32.mrf.mxu2  ;;  %v648_v4 = vpop.f32.mrf.mxu3 }
 0x170   : > { %v600_v5 = vadd.f32 %v1396_v34, %v599_v3 }
 0x172   : > { %v1431_v6 = vadd.f32 %v648_v4, %v600_v5 }
 0x174   : > { %684 = vmax.xlane.f32.xlu2 %v1431_v6 }
 0x177   : > { %v601_v7 = vpop.f32.mrf.mxu2  ;;  %v650_v8 = vpop.f32.mrf.mxu3 }
 0x178   : > { %v602_v9 = vadd.f32 %v1396_v34, %v601_v7 }
 0x17a   : > { %v1435_v10 = vadd.f32 %v650_v8, %v602_v9 }
 0x17c   : > { %686 = vmax.xlane.f32.xlu0 %v1435_v10 }
 0x17f   : > { %v604_v11 = vpop.f32.mrf.mxu2  ;;  %v653_v12 = vpop.f32.mrf.mxu3 }
 0x180   : > { %v605_v13 = vadd.f32 %v1396_v34, %v604_v11 }
 0x182   : > { %v1439_v14 = vadd.f32 %v653_v12, %v605_v13 }
 0x184   : > { %688 = vmax.xlane.f32.xlu1 %v1439_v14 }
 0x187   : > { %v606_v15 = vpop.f32.mrf.mxu2  ;;  %v655_v16 = vpop.f32.mrf.mxu3 }
 0x188   : > { %v607_v17 = vadd.f32 %v1396_v34, %v606_v15 }
 0x18a   : > { %v1443_v18 = vadd.f32 %v655_v16, %v607_v17 }
 0x18c   : > { %690 = vmax.xlane.f32.xlu2 %v1443_v18 }
 0x18f   : > { %v609_v19 = vpop.f32.mrf.mxu2  ;;  %v658_v20 = vpop.f32.mrf.mxu3 }
 0x190   : > { %v610_v21 = vadd.f32 %v1396_v34, %v609_v19 }
 0x192   : > { %v1447_v22 = vadd.f32 %v658_v20, %v610_v21 }
 0x194   : > { %692 = vmax.xlane.f32.xlu0 %v1447_v22 }
 0x197   : > { %v611_v23 = vpop.f32.mrf.mxu2  ;;  %v660_v24 = vpop.f32.mrf.mxu3 }
 0x198   : > { %v612_v25 = vadd.f32 %v1396_v34, %v611_v23 }
 0x19a   : > { %v1451_v26 = vadd.f32 %v660_v24, %v612_v25 }
 0x19c   : > { %694 = vmax.xlane.f32.xlu1 %v1451_v26 }
 0x19f   : > { %v614_v27 = vpop.f32.mrf.mxu2  ;;  %v663_v28 = vpop.f32.mrf.mxu3 }
 0x1a0   : > { %v615_v29 = vadd.f32 %v1396_v34, %v614_v27 }
 0x1a2   : > { %v1455_v30 = vadd.f32 %v663_v28, %v615_v29 }
 0x1a4   : > { %696 = vmax.xlane.f32.xlu2 %v1455_v30 }
 0x1a7   : > { %v616_v31 = vpop.f32.mrf.mxu2  ;;  %v669_v33 = vpop.xlane.xlu0 %668 }
 0x1a8   : > { %v617_v32 = vadd.f32 %v1396_v34, %v616_v31  ;;  %v665_v35 = vpop.f32.mrf.mxu3  ;;  %v700_v36 = vsub.f32 %v1399_v48, %v669_v33 }
 0x1aa   : > { %v1460_v37 = vadd.f32 %v665_v35, %v617_v32  ;;  %v716_v49 = vmul.f32 1.442695, %v700_v36 }
 0x1ac   : > { %698 = vmax.xlane.f32.xlu0 %v1460_v37  ;;  %1057 = vpow2.f32 %v716_v49 }
 0x1af   : > { %v671_v38 = vpop.xlane.xlu0 %670 }
 0x1b0   : > { %v701_v39 = vsub.f32 %v1403_v40, %v671_v38 }
 0x1b2   : > { %v1464_v41 = vpop.eup %1057  ;;  %v718_v42 = vmul.f32 1.442695, %v701_v39 }
 0x1b3   : > { %748 = vadd.xlane.f32.xlu1 %v1464_v41 }
 0x1b4   : > { %1059 = vpow2.f32 %v718_v42 }
 0x1b7   : > { %v673_v34 = vpop.xlane.xlu1 %672 }
 0x1b8   : > { %v702_v43 = vsub.f32 %v1407_v44, %v673_v34 }
 0x1ba   : > { %v720_v45 = vmul.f32 1.442695, %v702_v43  ;;  %v1468_v48 = vpop.eup %1059 }
 0x1bb   : > { %750 = vadd.xlane.f32.xlu2 %v1468_v48 }
 0x1bc   : > { %1061 = vpow2.f32 %v720_v45 }
 0x1bf   : > { %v675_v46 = vpop.xlane.xlu1 %674 }
 0x1c0   : > { %v703_v47 = vsub.f32 %v1411_v50, %v675_v46 }
 0x1c2   : > { %v1472_v51 = vpop.eup %1061  ;;  %v722_v40 = vmul.f32 1.442695, %v703_v47 }
 0x1c3   : > { %752 = vadd.xlane.f32.xlu0 %v1472_v51 }
 0x1c4   : > { %1063 = vpow2.f32 %v722_v40 }
 0x1c7   : > { %v677_v52 = vpop.xlane.xlu2 %676 }
 0x1c8   : > { %v704_v53 = vsub.f32 %v1415_v54, %v677_v52 }
 0x1ca   : > { %v1476_v55 = vpop.eup %1063  ;;  %v724_v44 = vmul.f32 1.442695, %v704_v53 }
 0x1cb   : > { %754 = vadd.xlane.f32.xlu1 %v1476_v55 }
 0x1cc   : > { %1065 = vpow2.f32 %v724_v44 }
 0x1cf   : > { %v679_v56 = vpop.xlane.xlu2 %678 }
 0x1d0   : > { %v705_v57 = vsub.f32 %v1419_v58, %v679_v56 }
 0x1d2   : > { %v1480_v59 = vpop.eup %1065  ;;  %v726_v50 = vmul.f32 1.442695, %v705_v57 }
 0x1d3   : > { %756 = vadd.xlane.f32.xlu2 %v1480_v59 }
 0x1d4   : > { %1067 = vpow2.f32 %v726_v50 }
 0x1d7   : > { %v681_v60 = vpop.xlane.xlu0 %680 }
 0x1d8   : > { %v706_v61 = vsub.f32 %v1423_v62, %v681_v60 }
 0x1da   : > { %v1484_v63 = vpop.eup %1067  ;;  %v728_v54 = vmul.f32 1.442695, %v706_v61 }
 0x1db   : > { %758 = vadd.xlane.f32.xlu0 %v1484_v63 }
 0x1dc   : > { %1069 = vpow2.f32 %v728_v54 }
 0x1df   : > { %v683_v0 = vpop.xlane.xlu1 %682 }
 0x1e0   : > { %v707_v1 = vsub.f32 %v1427_v2, %v683_v0 }
 0x1e2   : > { %v1488_v3 = vpop.eup %1069  ;;  %v730_v58 = vmul.f32 1.442695, %v707_v1 }
 0x1e3   : > { %760 = vadd.xlane.f32.xlu1 %v1488_v3 }
 0x1e4   : > { %1071 = vpow2.f32 %v730_v58 }
 0x1e7   : > { %v685_v4 = vpop.xlane.xlu2 %684 }
 0x1e8   : > { %v708_v5 = vsub.f32 %v1431_v6, %v685_v4 }
 0x1ea   : > { %v1492_v7 = vpop.eup %1071  ;;  %v732_v62 = vmul.f32 1.442695, %v708_v5 }
 0x1eb   : > { %762 = vadd.xlane.f32.xlu2 %v1492_v7 }
 0x1ec   : > { %1073 = vpow2.f32 %v732_v62 }
 0x1ef   : > { %v687_v8 = vpop.xlane.xlu0 %686 }
 0x1f0   : > { %v709_v9 = vsub.f32 %v1435_v10, %v687_v8 }
 0x1f2   : > { %v1496_v11 = vpop.eup %1073  ;;  %v734_v2 = vmul.f32 1.442695, %v709_v9 }
 0x1f3   : > { %764 = vadd.xlane.f32.xlu0 %v1496_v11 }
 0x1f4   : > { %1075 = vpow2.f32 %v734_v2 }
 0x1f7   : > { %v689_v12 = vpop.xlane.xlu1 %688 }
 0x1f8   : > { %v710_v13 = vsub.f32 %v1439_v14, %v689_v12 }
 0x1fa   : > { %v1500_v15 = vpop.eup %1075  ;;  %v736_v6 = vmul.f32 1.442695, %v710_v13 }
 0x1fb   : > { %766 = vadd.xlane.f32.xlu1 %v1500_v15 }
 0x1fc   : > { %1077 = vpow2.f32 %v736_v6 }
 0x1ff   : > { %v691_v16 = vpop.xlane.xlu2 %690 }
 0x200   : > { %v711_v17 = vsub.f32 %v1443_v18, %v691_v16 }
 0x202   : > { %v1504_v19 = vpop.eup %1077  ;;  %v738_v10 = vmul.f32 1.442695, %v711_v17 }
 0x203   : > { %768 = vadd.xlane.f32.xlu2 %v1504_v19 }
 0x204   : > { %1079 = vpow2.f32 %v738_v10 }
 0x207   : > { %v693_v20 = vpop.xlane.xlu0 %692 }
 0x208   : > { %v712_v21 = vsub.f32 %v1447_v22, %v693_v20 }
 0x20a   : > { %v1508_v23 = vpop.eup %1079  ;;  %v740_v14 = vmul.f32 1.442695, %v712_v21 }
 0x20b   : > { %770 = vadd.xlane.f32.xlu0 %v1508_v23 }
 0x20c   : > { %1081 = vpow2.f32 %v740_v14 }
 0x20f   : > { %v695_v24 = vpop.xlane.xlu1 %694 }
 0x210   : > { %v713_v25 = vsub.f32 %v1451_v26, %v695_v24 }
 0x212   : > { %v1512_v27 = vpop.eup %1081  ;;  %v742_v18 = vmul.f32 1.442695, %v713_v25 }
 0x213   : > { %772 = vadd.xlane.f32.xlu1 %v1512_v27 }
 0x214   : > { %1083 = vpow2.f32 %v742_v18 }
 0x217   : > { %v697_v28 = vpop.xlane.xlu2 %696 }
 0x218   : > { %v714_v22 = vsub.f32 %v1455_v30, %v697_v28 }
 0x21a   : > { %v1516_v29 = vpop.eup %1083  ;;  %v744_v31 = vmul.f32 1.442695, %v714_v22 }
 0x21b   : > { %774 = vadd.xlane.f32.xlu2 %v1516_v29 }
 0x21c   : > { %1085 = vpow2.f32 %v744_v31 }
 0x21f   : > { %v699_v32 = vpop.xlane.xlu0 %698 }
 0x220   : > { %v715_v26 = vsub.f32 %v1460_v37, %v699_v32 }
 0x222   : > { %v1520_v33 = vpop.eup %1085  ;;  %v746_v35 = vmul.f32 1.442695, %v715_v26 }
 0x223   : > { %776 = vadd.xlane.f32.xlu0 %v1520_v33 }
 0x224   : > { %1087 = vpow2.f32 %v746_v35 }
 0x226   : > { %v749_v36 = vpop.xlane.xlu1 %748 }
 0x227   : > { %1089 = vrcp.f32 %v749_v36 }
 0x22a   : > { %v1524_v49 = vpop.eup %1087 }
 0x22b   : > { %778 = vadd.xlane.f32.xlu1 %v1524_v49 }
 0x22d   : > { %v1090_v30 = vpop.eup %1089 }
 0x22e   : > { %v796_v38 = vmul.f32 %v1090_v30, %v1464_v41  ;;  %v751_v39 = vpop.xlane.xlu2 %750 }
 0x22f   : > { %1091 = vrcp.f32 %v751_v39 }
 0x230   : > { %812 = vst [vmem:[%s1530_s25] sm:$0xff] %v796_v38 }
 0x235   : > { %v1092_v37 = vpop.eup %1091 }
 0x236   : > { %v753_v42 = vpop.xlane.xlu0 %752  ;;  %v797_v34 = vmul.f32 %v1092_v37, %v1468_v48 }
 0x237   : > { %1093 = vrcp.f32 %v753_v42 }
 0x238   : > { %813 = vst [vmem:[%s1530_s25 + $0x8] sm:$0xff] %v797_v34 }
 0x23d   : > { %v1094_v43 = vpop.eup %1093 }
 0x23e   : > { %v798_v45 = vmul.f32 %v1094_v43, %v1472_v51  ;;  %v755_v41 = vpop.xlane.xlu1 %754 }
 0x23f   : > { %1095 = vrcp.f32 %v755_v41 }
 0x240   : > { %814 = vst [vmem:[%s1530_s25 + $0x10] sm:$0xff] %v798_v45 }
 0x245   : > { %v1096_v46 = vpop.eup %1095 }
 0x246   : > { %v799_v47 = vmul.f32 %v1096_v46, %v1476_v55  ;;  %v757_v40 = vpop.xlane.xlu2 %756 }
 0x247   : > { %1097 = vrcp.f32 %v757_v40 }
 0x248   : > { %815 = vst [vmem:[%s1530_s25 + $0x18] sm:$0xff] %v799_v47 }
 0x24d   : > { %v1098_v52 = vpop.eup %1097 }
 0x24e   : > { %v800_v48 = vmul.f32 %v1098_v52, %v1480_v59  ;;  %v759_v53 = vpop.xlane.xlu0 %758 }
 0x24f   : > { %1099 = vrcp.f32 %v759_v53 }
 0x250   : > { %816 = vst [vmem:[%s1530_s25 + $0x20] sm:$0xff] %v800_v48 }
 0x255   : > { %v1100_v44 = vpop.eup %1099 }
 0x256   : > { %v801_v51 = vmul.f32 %v1100_v44, %v1484_v63  ;;  %v761_v56 = vpop.xlane.xlu1 %760 }
 0x257   : > { %1101 = vrcp.f32 %v761_v56 }
 0x258   : > { %817 = vst [vmem:[%s1530_s25 + $0x28] sm:$0xff] %v801_v51 }
 0x25d   : > { %v1102_v57 = vpop.eup %1101 }
 0x25e   : > { %v802_v55 = vmul.f32 %v1102_v57, %v1488_v3  ;;  %v763_v50 = vpop.xlane.xlu2 %762 }
 0x25f   : > { %1103 = vrcp.f32 %v763_v50 }
 0x260   : > { %818 = vst [vmem:[%s1530_s25 + $0x30] sm:$0xff] %v802_v55 }
 0x265   : > { %v1104_v60 = vpop.eup %1103 }
 0x266   : > { %v803_v59 = vmul.f32 %v1104_v60, %v1492_v7  ;;  %v765_v61 = vpop.xlane.xlu0 %764 }
 0x267   : > { %1105 = vrcp.f32 %v765_v61 }
 0x268   : > { %819 = vst [vmem:[%s1530_s25 + $0x38] sm:$0xff] %v803_v59 }
 0x26d   : > { %v1106_v54 = vpop.eup %1105 }
 0x26e   : > { %v804_v63 = vmul.f32 %v1106_v54, %v1496_v11  ;;  %v767_v0 = vpop.xlane.xlu1 %766 }
 0x26f   : > { %1107 = vrcp.f32 %v767_v0 }
 0x270   : > { %820 = vst [vmem:[%s1530_s25 + $0x40] sm:$0xff] %v804_v63 }
 0x275   : > { %v1108_v1 = vpop.eup %1107 }
 0x276   : > { %v805_v3 = vmul.f32 %v1108_v1, %v1500_v15  ;;  %v769_v58 = vpop.xlane.xlu2 %768 }
 0x277   : > { %1109 = vrcp.f32 %v769_v58 }
 0x278   : > { %821 = vst [vmem:[%s1530_s25 + $0x48] sm:$0xff] %v805_v3 }
 0x27d   : > { %v1110_v4 = vpop.eup %1109 }
 0x27e   : > { %v806_v5 = vmul.f32 %v1110_v4, %v1504_v19  ;;  %v771_v7 = vpop.xlane.xlu0 %770 }
 0x27f   : > { %1111 = vrcp.f32 %v771_v7 }
 0x280   : > { %822 = vst [vmem:[%s1530_s25 + $0x50] sm:$0xff] %v806_v5 }
 0x285   : > { %v1112_v62 = vpop.eup %1111 }
 0x286   : > { %v807_v8 = vmul.f32 %v1112_v62, %v1508_v23  ;;  %v773_v9 = vpop.xlane.xlu1 %772 }
 0x287   : > { %1113 = vrcp.f32 %v773_v9 }
 0x288   : > { %823 = vst [vmem:[%s1530_s25 + $0x58] sm:$0xff] %v807_v8 }
 0x28d   : > { %v1114_v11 = vpop.eup %1113 }
 0x28e   : > { %v808_v2 = vmul.f32 %v1114_v11, %v1512_v27  ;;  %v775_v12 = vpop.xlane.xlu2 %774 }
 0x28f   : > { %1115 = vrcp.f32 %v775_v12 }
 0x290   : > { %824 = vst [vmem:[%s1530_s25 + $0x60] sm:$0xff] %v808_v2 }
 0x295   : > { %v1116_v13 = vpop.eup %1115 }
 0x296   : > { %v809_v15 = vmul.f32 %v1116_v13, %v1516_v29  ;;  %v777_v6 = vpop.xlane.xlu0 %776 }
 0x297   : > { %1117 = vrcp.f32 %v777_v6 }
 0x298   : > { %825 = vst [vmem:[%s1530_s25 + $0x68] sm:$0xff] %v809_v15 }
 0x29d   : > { %v1118_v16 = vpop.eup %1117 }
 0x29e   : > { %v810_v17 = vmul.f32 %v1118_v16, %v1520_v33  ;;  %v779_v19 = vpop.xlane.xlu1 %778 }
 0x29f   : > { %1119 = vrcp.f32 %v779_v19 }
 0x2a0   : > { %826 = vst [vmem:[%s1530_s25 + $0x70] sm:$0xff] %v810_v17 }
 0x2a5   : > { %v1120_v10 = vpop.eup %1119 }
 0x2a6   : > { %v811_v20 = vmul.f32 %v1120_v10, %v1524_v49 }
 0x2a8   : > { %827 = vst [vmem:[%s1530_s25 + $0x78] sm:$0xff] %v811_v20 }
 0x2a9   : > { %1148 = shalt.err (!%p1145_p3)
}
 0x2aa   : > { %s1185_s17 = smov 128   ;;  %s1186_s23 = smov 8  }
 0x2ab   : > { %1015 = dma.vmem_to_hbm [thread:$0]  (%p1255_p5), %s842_s8, 2048, %s844_s9, %s829_s22, %s1185_s17, %s1185_s17, %s1186_s23  }
 0x2ac PF: > { %p1021_p4 = scmp.ge.s32.totalorder %s1183_s21, 2  ;;  %s858_s25 = sand.u32 1, %s1171_s18  }
 0x2ad   : > { %s859_s26 = scalar_lea.sflag [#allocation3], %s858_s25 }
 0x2ae   : > { %p1018_p7 = pnand %p1021_p4, %p1259_p6 }
 0x2b0   : > { %p1019_p8 = pneg %p1018_p7 }
 0x2b2   : > { %1166 = dma.done.wait (%p1019_p8), %s859_s26, 2048  }
 0x2b3   : > { %1168 = vsyncadd (%p1019_p8), %s859_s26, 4294965248  ;;  %p15_p9 = scmp.ge.s32.totalorder %s1242_s24, 4   ;;  %s1605_s18 = smov %s1175_s19 }
 0x2b4   : > { %s1606_s19 = smov %s1179_s20  ;;  %s1607_s20 = smov %s1253_s27 }
 0x2b5   : > { %s1608_s21 = smov %s1242_s24  ;;  %17 = sbr.rel (!%p15_p9) target bundleno = 3 (0x3), region = 75 }
 0x2ba   :  { %865 = vsyncpa [#allocation3], 1 }
 0x2bb   :  { %867 = vsyncpa [#allocation3 + $0x1], 1 }

</bundles_post_ra>
